<compile_context>
chip_gen: v7x
topology: tpu7x:2x2x1
jax: 0.10.0
libtpu: 0.0.40
codegen_flags: <defaults>
</compile_context>

<pallas_src>
import functools
import math

import jax
import jax.numpy as jnp
from jax import lax
from jax.experimental import pallas as pl
from jax.experimental.pallas import tpu as pltpu


# ---------------------------------------------------------------------------
# small helpers
# ---------------------------------------------------------------------------

def _conv1x1(x2d, w):
    """1x1 conv == (M, Cin) @ (Cin, Co) in f32.

    For tiny channel counts the MXU would run at <0.1% utilization and only
    pay push/pop latency, so use Cin broadcast-FMAs on the VPU instead. For
    realistic GhostNet widths keep the MXU matmul (f32 here to preserve
    PyTorch parity; cast operands to bf16 for ~2-4x MXU throughput on
    v6e/v7x when the accuracy budget allows).
    """
    cin, co = w.shape
    if cin <= 8 and co <= 32:
        y = x2d[:, 0:1] * w[0:1, :]
        for c in range(1, cin):
            y = y + x2d[:, c:c + 1] * w[c:c + 1, :]
        return y
    return jnp.dot(x2d, w, preferred_element_type=jnp.float32)


def _zero_pad_hw(x):
    """Zero-pad a (N, H, W, C) register value by 1 on each side of H and W."""
    n, h, w, c = x.shape
    zrow = jnp.zeros((n, 1, w, c), x.dtype)
    xp = jnp.concatenate([zrow, x, zrow], axis=1)
    zcol = jnp.zeros((n, h + 2, 1, c), x.dtype)
    return jnp.concatenate([zcol, xp, zcol], axis=2)


def _largest_divisor_leq(n, cap):
    cap = max(1, min(n, cap))
    for d in range(cap, 0, -1):
        if n % d == 0:
            return d
    return 1


def _vmem_capacity_bytes():
    # Per-generation tile sizing: 64 MiB per core on v7x, 128 MiB on v5e/v6e.
    try:
        return int(pltpu.get_tpu_info().vmem_capacity_bytes)
    except Exception:
        return 64 * 1024 * 1024  # assume the smallest generation


# ---------------------------------------------------------------------------
# pass 1: per-channel sum / sum-of-squares of relu(conv1x1(x))
# ---------------------------------------------------------------------------

def _ghost_stats_kernel(x_ref, w1_ref, stats_ref):
    @pl.when((pl.program_id(0) == 0) & (pl.program_id(1) == 0))
    def _init():
        stats_ref[...] = jnp.zeros_like(stats_ref)

    tn, th, w, cin = x_ref.shape
    x = x_ref[...].astype(jnp.float32).reshape(tn * th * w, cin)
    y = jnp.maximum(_conv1x1(x, w1_ref[...].astype(jnp.float32)), 0.0)
    part = jnp.concatenate(
        [jnp.sum(y, axis=0, keepdims=True),
         jnp.sum(y * y, axis=0, keepdims=True)], axis=0)  # (2, Cinit), f32
    stats_ref[...] += part


# ---------------------------------------------------------------------------
# pass 2: normalize + depthwise 3x3 + channel-half writes
# ---------------------------------------------------------------------------

def _ghost_apply_kernel(x_ref, w1_ref, gamma_ref, beta_ref, wdw_ref, stats_ref,
                        out_ref, *, count, eps, out_channels):
    f32 = jnp.float32
    tn, h, w, cin = x_ref.shape
    ci = w1_ref.shape[1]
    cnew = out_channels - ci  # channels taken from the cheap branch

    # primary conv (recomputed from x; cheaper than an extra HBM round-trip
    # of the intermediate y) + ReLU (module applies ReLU before BatchNorm).
    x = x_ref[...].astype(f32).reshape(tn * h * w, cin)
    y = jnp.maximum(_conv1x1(x, w1_ref[...].astype(f32)), 0.0)

    # BatchNorm2d, train-mode: global batch stats (biased variance).
    inv_count = 1.0 / count
    stats = stats_ref[...]                                # (2, Ci)
    mean = stats[0:1, :] * inv_count                      # (1, Ci)
    var = stats[1:2, :] * inv_count - mean * mean
    inv_std = lax.rsqrt(var + eps)                        # EUP slot
    scale = gamma_ref[...] * inv_std                      # (1, Ci)
    shift = beta_ref[...] - mean * scale
    x1 = (y * scale + shift).reshape(tn, h, w, ci)

    # cheap_operation: depthwise 3x3, stride 1, zero pad 1 — accumulated
    # entirely in registers (no VMEM scratch, no ref read-modify-writes).
    taps = wdw_ref[...].astype(f32)                       # hoisted out of loop
    xp = _zero_pad_hw(x1)
    x2 = None
    for dy in range(3):
        for dx in range(3):
            tap = taps[dy:dy + 1, dx:dx + 1, :].reshape(1, 1, 1, ci)
            contrib = xp[:, dy:dy + h, dx:dx + w, :] * tap
            x2 = contrib if x2 is None else x2 + contrib

    # concat + slice replaced by direct stores into the two channel halves.
    out_ref[:, :, :, 0:ci] = x1.astype(out_ref.dtype)
    out_ref[:, :, :, ci:out_channels] = x2[:, :, :, 0:cnew].astype(out_ref.dtype)


# ---------------------------------------------------------------------------
# wrappers
# ---------------------------------------------------------------------------

def ghost_module_nhwc(x_nhwc, w1, gamma, beta, wdw, out_channels, eps=1e-5):
    n, h, w, cin = x_nhwc.shape
    ci = w1.shape[1]
    # Kernel assumes the default ratio=2 GhostModule (depthwise multiplier 1).
    assert out_channels <= 2 * ci, "only the default ratio=2 config is supported"

    gamma2 = gamma.reshape(1, ci).astype(jnp.float32)
    beta2 = beta.reshape(1, ci).astype(jnp.float32)

    # ---- pass 1: tiled stats reduction over (N, H-blocks) ----
    bytes_per_row = w * cin * x_nhwc.dtype.itemsize
    vmem_rows = max(1, _vmem_capacity_bytes() // (8 * max(1, bytes_per_row)))
    th = _largest_divisor_leq(h, min(8, vmem_rows))

    stats = pl.pallas_call(
        _ghost_stats_kernel,
        out_shape=jax.ShapeDtypeStruct((2, ci), jnp.float32),
        grid=(n, h // th),
        in_specs=[
            pl.BlockSpec((1, th, w, cin), lambda i, j: (i, j, 0, 0)),
            pl.BlockSpec((cin, ci), lambda i, j: (0, 0)),
        ],
        out_specs=pl.BlockSpec((2, ci), lambda i, j: (0, 0)),
        compiler_params=pltpu.CompilerParams(
            dimension_semantics=("arbitrary", "arbitrary")),
    )(x_nhwc, w1)

    # ---- pass 2: normalize + depthwise + write, tiled over batch ----
    # TODO(synk): add H-tiling with a 1-row halo (overlapped index_map) for
    # feature maps whose full (H, W) plane does not fit VMEM on v7x.
    kernel2 = functools.partial(
        _ghost_apply_kernel, count=float(n * h * w), eps=eps,
        out_channels=out_channels)

    return pl.pallas_call(
        kernel2,
        out_shape=jax.ShapeDtypeStruct((n, h, w, out_channels), x_nhwc.dtype),
        grid=(n,),
        in_specs=[
            pl.BlockSpec((1, h, w, cin), lambda i: (i, 0, 0, 0)),
            pl.BlockSpec((cin, ci), lambda i: (0, 0)),
            pl.BlockSpec((1, ci), lambda i: (0, 0)),
            pl.BlockSpec((1, ci), lambda i: (0, 0)),
            pl.BlockSpec((3, 3, ci), lambda i: (0, 0, 0)),
            pl.BlockSpec((2, ci), lambda i: (0, 0)),
        ],
        out_specs=pl.BlockSpec((1, h, w, out_channels), lambda i: (i, 0, 0, 0)),
        compiler_params=pltpu.CompilerParams(
            dimension_semantics=("parallel",)),
    )(x_nhwc, w1, gamma2, beta2, wdw, stats)


def ghost_module(x_nchw, w1, gamma, beta, wdw, out_channels):
    """PyTorch-facing compatibility wrapper (NCHW in / NCHW out).

    Prefer ghost_module_nhwc with an NHWC model layout: each transpose here is
    a full HBM round-trip of the activation, comparable in cost to the kernel
    itself for this memory-bound op.
    """
    x_nhwc = jnp.transpose(x_nchw, (0, 2, 3, 1))
    out_nhwc = ghost_module_nhwc(x_nhwc, w1, gamma, beta, wdw, out_channels)
    return jnp.transpose(out_nhwc, (0, 3, 1, 2))


# ---------------------------------------------------------------------------
# pure-JAX reference (mirrors the PyTorch forward, train-mode BN)
# ---------------------------------------------------------------------------

def ghost_reference(x_nchw, w1, gamma, beta, wdw, out_channels, eps=1e-5):
    x = jnp.transpose(x_nchw, (0, 2, 3, 1)).astype(jnp.float32)
    H, W = x.shape[1], x.shape[2]
    y = jnp.einsum("nhwc,co->nhwo", x, w1)
    y = jnp.maximum(y, 0.0)
    mean = jnp.mean(y, axis=(0, 1, 2), keepdims=True)
    var = jnp.mean(jnp.square(y - mean), axis=(0, 1, 2), keepdims=True)
    x1 = (y - mean) / jnp.sqrt(var + eps) * gamma + beta
    xp = jnp.pad(x1, ((0, 0), (1, 1), (1, 1), (0, 0)))
    x2 = jnp.zeros_like(x1)
    for dy in range(3):
        for dx in range(3):
            x2 = x2 + xp[:, dy:dy + H, dx:dx + W, :] * wdw[dy, dx, :]
    out = jnp.concatenate([x1, x2], axis=-1)[..., :out_channels]
    return jnp.transpose(out, (0, 3, 1, 2))


if __name__ == "__main__":
    # batch=2, in_channels=4, out_channels=8, spatial=16x16; module defaults
    # kernel_size=1, ratio=2, dw_size=3, stride=1, relu=True.
    N, Cin, H, W = 2, 4, 16, 16
    out_channels, ratio, dw_size = 8, 2, 3
    init_channels = math.ceil(out_channels / ratio)          # 4
    new_channels = init_channels * (ratio - 1)                # 4 (multiplier 1)
    assert new_channels == init_channels  # kernel assumes the default ratio=2

    key = jax.random.PRNGKey(0)
    k1, k2, k3, k4, k5 = jax.random.split(key, 5)
    x = jax.random.normal(k1, (N, Cin, H, W), jnp.float32)
    # PyTorch param shapes: primary (Cinit,Cin,1,1), depthwise (Cnew,1,3,3);
    # stored here as (Cin,Cinit) and (3,3,Cinit).
    w1 = jax.random.normal(k2, (Cin, init_channels), jnp.float32) * 0.5
    wdw = jax.random.normal(k3, (dw_size, dw_size, init_channels), jnp.float32) * 0.3
    gamma = 1.0 + 0.1 * jax.random.normal(k4, (init_channels,), jnp.float32)
    beta = 0.1 * jax.random.normal(k5, (init_channels,), jnp.float32)

    out = ghost_module(x, w1, gamma, beta, wdw, out_channels)
    out = jax.block_until_ready(out)

    ref = ghost_reference(x, w1, gamma, beta, wdw, out_channels)
    assert out.shape == (N, out_channels, H, W)
    if not jnp.allclose(out, ref, atol=1e-4, rtol=1e-4):
        raise AssertionError("Pallas kernel mismatch vs JAX reference")
    print("KERNEL_OK")
</pallas_src>

<mosaic_0001>
module attributes {stable_mosaic.version = 11 : i64} {
  func.func @_ghost_stats_kernel(%arg0: i32, %arg1: i32, %arg2: memref<1x8x16x4xf32, #tpu.memory_space<vmem>>, %arg3: memref<4x4xf32, #tpu.memory_space<vmem>>, %arg4: memref<2x4xf32, #tpu.memory_space<vmem>>) attributes {dimension_semantics = [#tpu.dimension_semantics<arbitrary>, #tpu.dimension_semantics<arbitrary>], iteration_bounds = array<i64: 2, 2>, scalar_prefetch = 0 : i64, scratch_operands = 0 : i64, tpu.core_type = #tpu.core_type<tc>, window_params = [{transform_indices = @transform_0, window_bounds = array<i64: 1, 8, 16, 4>}, {pipeline_mode = #tpu.pipeline_mode<synchronous>, transform_indices = @transform_1, window_bounds = array<i64: 4, 4>}, {pipeline_mode = #tpu.pipeline_mode<synchronous>, transform_indices = @transform_2, window_bounds = array<i64: 2, 4>}]} {
    %c0_i32 = arith.constant 0 : i32
    %0 = arith.cmpi eq, %arg0, %c0_i32 : i32
    %c0_i32_0 = arith.constant 0 : i32
    %1 = arith.cmpi eq, %arg1, %c0_i32_0 : i32
    %2 = arith.andi %0, %1 : i1
    %3 = arith.extui %2 : i1 to i32
    %c0_i32_1 = arith.constant 0 : i32
    %4 = arith.cmpi ne, %3, %c0_i32_1 : i32
    scf.if %4 {
      %cst_13 = arith.constant 0.000000e+00 : f32
      %42 = vector.broadcast %cst_13 : f32 to vector<2x4xf32>
      %c0_14 = arith.constant 0 : index
      %c0_15 = arith.constant 0 : index
      %43 = vector.load %arg4[%c0_14, %c0_15] : memref<2x4xf32, #tpu.memory_space<vmem>>, vector<2x4xf32>
      tpu.vector_store %arg4[%c0_14, %c0_15], %42 {strides = array<i32>} : memref<2x4xf32, #tpu.memory_space<vmem>>, vector<2x4xf32>,
    } else {
    }
    %c0 = arith.constant 0 : index
    %c0_2 = arith.constant 0 : index
    %c0_3 = arith.constant 0 : index
    %c0_4 = arith.constant 0 : index
    %5 = vector.load %arg2[%c0, %c0_2, %c0_3, %c0_4] : memref<1x8x16x4xf32, #tpu.memory_space<vmem>>, vector<1x8x16x4xf32>
    %6 = vector.shape_cast %5 : vector<1x8x16x4xf32> to vector<128x4xf32>
    %c0_5 = arith.constant 0 : index
    %c0_6 = arith.constant 0 : index
    %7 = vector.load %arg3[%c0_5, %c0_6] : memref<4x4xf32, #tpu.memory_space<vmem>>, vector<4x4xf32>
    %8 = vector.extract_strided_slice %6 {offsets = [0, 0], sizes = [128, 1], strides = [1, 1]} : vector<128x4xf32> to vector<128x1xf32>
    %9 = vector.extract_strided_slice %7 {offsets = [0, 0], sizes = [1, 4], strides = [1, 1]} : vector<4x4xf32> to vector<1x4xf32>
    %10 = vector.broadcast %8 : vector<128x1xf32> to vector<128x4xf32>
    %11 = vector.broadcast %9 : vector<1x4xf32> to vector<128x4xf32>
    %12 = arith.mulf %10, %11 : vector<128x4xf32>
    %13 = vector.extract_strided_slice %6 {offsets = [0, 1], sizes = [128, 1], strides = [1, 1]} : vector<128x4xf32> to vector<128x1xf32>
    %14 = vector.extract_strided_slice %7 {offsets = [1, 0], sizes = [1, 4], strides = [1, 1]} : vector<4x4xf32> to vector<1x4xf32>
    %15 = vector.broadcast %13 : vector<128x1xf32> to vector<128x4xf32>
    %16 = vector.broadcast %14 : vector<1x4xf32> to vector<128x4xf32>
    %17 = arith.mulf %15, %16 : vector<128x4xf32>
    %18 = arith.addf %12, %17 : vector<128x4xf32>
    %19 = vector.extract_strided_slice %6 {offsets = [0, 2], sizes = [128, 1], strides = [1, 1]} : vector<128x4xf32> to vector<128x1xf32>
    %20 = vector.extract_strided_slice %7 {offsets = [2, 0], sizes = [1, 4], strides = [1, 1]} : vector<4x4xf32> to vector<1x4xf32>
    %21 = vector.broadcast %19 : vector<128x1xf32> to vector<128x4xf32>
    %22 = vector.broadcast %20 : vector<1x4xf32> to vector<128x4xf32>
    %23 = arith.mulf %21, %22 : vector<128x4xf32>
    %24 = arith.addf %18, %23 : vector<128x4xf32>
    %25 = vector.extract_strided_slice %6 {offsets = [0, 3], sizes = [128, 1], strides = [1, 1]} : vector<128x4xf32> to vector<128x1xf32>
    %26 = vector.extract_strided_slice %7 {offsets = [3, 0], sizes = [1, 4], strides = [1, 1]} : vector<4x4xf32> to vector<1x4xf32>
    %27 = vector.broadcast %25 : vector<128x1xf32> to vector<128x4xf32>
    %28 = vector.broadcast %26 : vector<1x4xf32> to vector<128x4xf32>
    %29 = arith.mulf %27, %28 : vector<128x4xf32>
    %30 = arith.addf %24, %29 : vector<128x4xf32>
    %cst = arith.constant 0.000000e+00 : f32
    %31 = vector.broadcast %cst : f32 to vector<128x4xf32>
    %32 = arith.maximumf %30, %31 : vector<128x4xf32>
    %cst_7 = arith.constant dense<0.000000e+00> : vector<4xf32>
    %33 = vector.multi_reduction <add>, %32, %cst_7 [0] : vector<128x4xf32> to vector<4xf32>
    %34 = vector.shape_cast %33 : vector<4xf32> to vector<1x4xf32>
    %35 = arith.mulf %32, %32 : vector<128x4xf32>
    %cst_8 = arith.constant dense<0.000000e+00> : vector<4xf32>
    %36 = vector.multi_reduction <add>, %35, %cst_8 [0] : vector<128x4xf32> to vector<4xf32>
    %37 = vector.shape_cast %36 : vector<4xf32> to vector<1x4xf32>
    %38 = tpu.concatenate %34, %37 in 0 : vector<1x4xf32>, vector<1x4xf32> -> vector<2x4xf32>
    %c0_9 = arith.constant 0 : index
    %c0_10 = arith.constant 0 : index
    %39 = vector.load %arg4[%c0_9, %c0_10] : memref<2x4xf32, #tpu.memory_space<vmem>>, vector<2x4xf32>
    %40 = arith.addf %39, %38 : vector<2x4xf32>
    %c0_11 = arith.constant 0 : index
    %c0_12 = arith.constant 0 : index
    %41 = vector.load %arg4[%c0_11, %c0_12] : memref<2x4xf32, #tpu.memory_space<vmem>>, vector<2x4xf32>
    tpu.vector_store %arg4[%c0_11, %c0_12], %40 {strides = array<i32>} : memref<2x4xf32, #tpu.memory_space<vmem>>, vector<2x4xf32>,
    return
  }
  func.func @transform_0(%arg0: i32, %arg1: i32) -> (i32, i32, i32, i32) {
    %c0_i32 = arith.constant 0 : i32
    %c0_i32_0 = arith.constant 0 : i32
    %c0_i32_1 = arith.constant 0 : i32
    return %arg0, %arg1, %c0_i32, %c0_i32_0 : i32, i32, i32, i32
  }
  func.func @transform_1(%arg0: i32, %arg1: i32) -> (i32, i32) {
    %c0_i32 = arith.constant 0 : i32
    %c0_i32_0 = arith.constant 0 : i32
    %c0_i32_1 = arith.constant 0 : i32
    return %c0_i32, %c0_i32_0 : i32, i32
  }
  func.func @transform_2(%arg0: i32, %arg1: i32) -> (i32, i32) {
    %c0_i32 = arith.constant 0 : i32
    %c0_i32_0 = arith.constant 0 : i32
    %c0_i32_1 = arith.constant 0 : i32
    return %c0_i32, %c0_i32_0 : i32, i32
  }
}

</mosaic_0001>

<bundles_post_ra>
// kernel: tpu_custom_call.1
= control target key start
LH: loop header
LB: loop body
LE: loop exit
PB: predicated region body
PF: predicated region fallthrough
CT: control target
= control target key end

     0   :  { %7 = vsyncpa [#allocation3], 0  ;;  %s941_s9 = smov 0   ;;  %s943_s10 = smov 0   ;;  %s1272_s0 = inlined_call_operand.vmem [shape: f32[2,16,16,4], index: 0, kind: input, shape index: {}]   ;;  %s1273_s1 = inlined_call_operand.vmem [shape: f32[4,4], index: 1, kind: input, shape index: {}]   ;;  %s1274_s2 = inlined_call_operand.hbm [shape: f32[2,4], index: 2, kind: output, shape index: {}]  }
   0x1   :  { %s945_s11 = smov 0   ;;  %s947_s12 = smov 0  }
   0x2   :  { %s949_s13 = smov 0  }
   0x3 LB: > { %s766_s14 = sadd.s32 4294967295, %s918_s13   ;;  %s22_s15 = sadd.s32 1, %s910_s11  ;;  %s918_s13 = sphi %s949_s13, %s13_s13   ;;  %s914_s12 = sphi %s947_s12, %s1279_s12   ;;  %s910_s11 = sphi %s945_s11, %s1278_s11   ;;  %s906_s10 = sphi %s943_s10, %s1277_s10   ;;  %s902_s9 = sphi %s941_s9, %s1276_s9  }
   0x4   : > { %p23_p0 = scmp.ge.s32.totalorder %s22_s15, 2  ;;  %s25_s16 = sadd.s32 1, %s914_s12 }
   0x5   : > { %p769_p1 = scmp.ge.s32.totalorder %s918_s13, 1  ;;  %p128_p2 = scmp.lt.s32.totalorder %s918_s13, 5 }
   0x6   : > { %s1281_s15 = smov (%p23_p0, %s22_s15), 0  ;;  %s1283_s16 = smov (!%p23_p0, %s25_s16), %s914_s12 }
   0x7   : > { %p129_p3 = pnand %p769_p1, %p128_p2  ;;  %p27_p4 = scmp.ge.s32.totalorder %s1283_s16, 2 }
   0x8   : > { %s770_s17 = sshll.u32 (!%p129_p3), %s902_s9, 3  ;;  %p151_p5 = scmp.lt.s32.totalorder (!%p129_p3), %s906_s10, 1 }
   0x9   : > { %s1285_s16 = smov (%p27_p4, %s1283_s16), 0  ;;  %132 = sbr.rel (%p129_p3) target bundleno = 355 (0x163), region = 28 }
   0xa   : > { %p153_p6 = scmp.lt.s32.totalorder (!%p129_p3), %s770_s17, 15  ;;  %p161_p7 = scmp.eq.s32.totalorder (!%p129_p3), %s906_s10, 0 }
   0xb   : > { %p162_p8 = scmp.eq.s32.totalorder (!%p129_p3), %s902_s9, 0 }
   0xd   : > { %p163_p9 = pnand (!%p129_p3), %p162_p8, %p161_p7 }
  0x10   : > { %s1287_s10 = smov (!%p151_p5, %s906_s10), 1  ;;  %s1289_s17 = smov (!%p153_p6, %s770_s17), 15 }
  0x11   : > { %s772_s18 = sshll.u32 %s1287_s10, 5  ;;  %s771_s19 = sshll.u32 %s1289_s17, 1  ;;  %vm167_vm0 = vcmask (!%p163_p9), 25600   ;;  %v920_v0 = vmov (!%p163_p9), 0.0  }
  0x12   : > { %s157_s20 = sadd.s32 %s772_s18, %s771_s19  ;;  %166 = sbr.rel (%p163_p9) target bundleno = 25 (0x19), region = 32  ;;  %168 = vst.msk [vmem:[#allocation2] sm:$0x3] (!%p163_p9), %vm167_vm0, %v920_v0 }
  0x13   : > { %s773_s21 = sshll.u32 %s157_s20, 3 }
  0x14   : > { %s975_s24 = scalar_lea.vmem %s1272_s0, %s773_s21 }
  0x19 PF: > { %v978_v1 = vld [vmem:[%s975_s24 + $0x10] sm:$0xff]  ;;  %v169_v2 = vld [vmem:[%s975_s24] sm:$0xff]  ;;  %v921_v3 = vmov 0   ;;  %v983_v4 = vld [vmem:[%s975_s24 + $0x18] sm:$0xff]  ;;  %v922_v18 = vmov 1   ;;  %v923_v19 = vmov 2   ;;  %v266_v31 = vlaneseq }
  0x1a   : > { %831 = vset.pattern.permute.xlu1 %v921_v3  ;;  %830 = vset.pattern.permute.xlu0 %v921_v3  ;;  %v170_v5 = vld [vmem:[%s975_s24 + $0x8] sm:$0xff]  ;;  %v173_v7 = vld [vmem:[%s975_s24 + $0x20] sm:$0xff]  ;;  %v176_v8 = vld [vmem:[%s975_s24 + $0x38] sm:$0xff]  ;;  %v924_v20 = vmov 3   ;;  %vm602_vm1 = vcmask 31744   ;;  %vm693_vm2 = vcmask 1040384  }
  0x1b   : > { %198 = vperm.xlu1 %831, %v978_v1   ;;  %188 = vperm.xlu0 %830, %v169_v2   ;;  %v988_v6 = vld [vmem:[%s975_s24 + $0x28] sm:$0xff]  ;;  %v994_v9 = vld [vmem:[%s975_s24 + $0x30] sm:$0xff]  ;;  %v1001_v11 = vld [vmem:[%s975_s24 + $0x40] sm:$0xff]  ;;  %v267_v34 = vshrl.u32 %v266_v31, 7  ;;  %s925_s27 = smov [#allocation2]   ;;  %vm697_vm3 = vcmask 25600  }
  0x1c   : > { %v998_v10 = vld [vmem:[%s975_s24 + $0x48] sm:$0xff]  ;;  %v1006_v12 = vld [vmem:[%s975_s24 + $0x58] sm:$0xff]  ;;  %v179_v13 = vld [vmem:[%s975_s24 + $0x50] sm:$0xff]  ;;  %s706_s28 = sshll.u32 %s925_s27, 4  ;;  %p1231_p10 = scmp.eq.s32.totalorder %s766_s14, 3  ;;  %s707_s28 = int_to_ptr.vmem [resolvable:$true] %s706_s28 }
  0x1d   : > { %v182_v14 = vld [vmem:[%s975_s24 + $0x68] sm:$0xff]  ;;  %v1012_v15 = vld [vmem:[%s975_s24 + $0x60] sm:$0xff]  ;;  %v1016_v16 = vld [vmem:[%s975_s24 + $0x78] sm:$0xff]  ;;  %v268_v37 = vsub.s32 0, %v267_v34  ;;  %v352_v38 = vsub.s32 1, %v267_v34  ;;  %s850_s30 = scalar_lea.vmem %s707_s28, 32  ;;  %p857_p0 = scmp.lt.s32.totalorder %s707_s28, %s707_s28 }
  0x1e   : > { %v1019_v17 = vld [vmem:[%s975_s24 + $0x70] sm:$0xff]  ;;  %v185_v39 = vld [vmem:[%s1273_s1] sm:$0xf]  ;;  %p851_p11 = scmp.ne.s32.totalorder %s707_s28, %s850_s30  ;;  %p858_p1 = scmp.lt.s32.totalorder %s850_s30, %s850_s30 }
  0x1f   : > { %203 = vperm.xlu1 %831, %v983_v4   ;;  %193 = vperm.xlu0 %830, %v170_v5   ;;  %v1071_v42 = vrot.slane %v185_v39, %v268_v37  ;;  %v1074_v43 = vrot.slane %v185_v39, %v352_v38 }
  0x20   : > { %p852_p12 = pnand %p851_p11, %p1231_p10  ;;  %p859_p2 = por %p858_p1, %p857_p0 }
  0x22   : > { %p853_p13 = pneg %p852_p12 }
  0x23   : > { %213 = vperm.xlu1 %831, %v988_v6   ;;  %208 = vperm.xlu0 %830, %v173_v7  }
  0x24   : > { %p860_p3 = pnand %p859_p2, %p853_p13 }
  0x27   : > { %223 = vperm.xlu1 %831, %v176_v8   ;;  %218 = vperm.xlu0 %830, %v994_v9  }
  0x2b   : > { %233 = vperm.xlu1 %831, %v998_v10   ;;  %228 = vperm.xlu0 %830, %v1001_v11  }
  0x2f   : > { %243 = vperm.xlu1 %831, %v1006_v12   ;;  %238 = vperm.xlu0 %830, %v179_v13  }
  0x33   : > { %253 = vperm.xlu1 %831, %v182_v14   ;;  %248 = vperm.xlu0 %830, %v1012_v15  }
  0x37   : > { %263 = vperm.xlu1 %831, %v1016_v16   ;;  %258 = vperm.xlu0 %830, %v1019_v17  }
  0x3b   : > { %833 = vset.pattern.permute.xlu1 %v922_v18  ;;  %832 = vset.pattern.permute.xlu0 %v922_v18 }
  0x3c   : > { %291 = vperm.xlu1 %833, %v170_v5   ;;  %287 = vperm.xlu0 %832, %v169_v2  }
  0x40   : > { %295 = vperm.xlu1 %833, %v978_v1   ;;  %299 = vperm.xlu0 %832, %v983_v4  }
  0x44   : > { %303 = vperm.xlu1 %833, %v173_v7   ;;  %307 = vperm.xlu0 %832, %v988_v6  }
  0x48   : > { %311 = vperm.xlu1 %833, %v994_v9   ;;  %315 = vperm.xlu0 %832, %v176_v8  }
  0x4c   : > { %319 = vperm.xlu1 %833, %v1001_v11   ;;  %323 = vperm.xlu0 %832, %v998_v10  }
  0x50   : > { %327 = vperm.xlu1 %833, %v179_v13   ;;  %331 = vperm.xlu0 %832, %v1006_v12  }
  0x54   : > { %335 = vperm.xlu1 %833, %v1012_v15   ;;  %339 = vperm.xlu0 %832, %v182_v14  }
  0x58   : > { %343 = vperm.xlu1 %833, %v1019_v17   ;;  %347 = vperm.xlu0 %832, %v1016_v16  }
  0x5c   : > { %834 = vset.pattern.permute.xlu1 %v923_v19  ;;  %835 = vset.pattern.permute.xlu0 %v923_v19 }
  0x5d   : > { %387 = vperm.xlu1 %834, %v169_v2   ;;  %391 = vperm.xlu0 %835, %v170_v5  }
  0x61   : > { %395 = vperm.xlu1 %834, %v978_v1   ;;  %837 = vset.pattern.permute.xlu0 %v924_v20 }
  0x62   : > { %491 = vperm.xlu0 %837, %v170_v5  }
  0x65   : > { %836 = vset.pattern.permute.xlu1 %v924_v20 }
  0x66   : > { %487 = vperm.xlu1 %836, %v169_v2   ;;  %503 = vperm.xlu0 %837, %v173_v7  }
  0x6a   : > { %838 = vset.pattern.permute.xlu1 %v923_v19  ;;  %515 = vperm.xlu0 %837, %v176_v8  }
  0x6b   : > { %399 = vperm.xlu1 %838, %v983_v4  }
  0x6e   : > { %527 = vperm.xlu0 %837, %v179_v13  }
  0x6f   : > { %839 = vset.pattern.permute.xlu1 %v924_v20 }
  0x70   : > { %495 = vperm.xlu1 %839, %v978_v1  }
  0x72   : > { %845 = vset.pattern.permute.xlu0 %v923_v19 }
  0x73   : > { %403 = vperm.xlu0 %845, %v173_v7  }
  0x74   : > { %499 = vperm.xlu1 %839, %v983_v4  }
  0x77   : > { %415 = vperm.xlu0 %845, %v176_v8  }
  0x78   : > { %840 = vset.pattern.permute.xlu1 %v923_v19 }
  0x79   : > { %407 = vperm.xlu1 %840, %v988_v6  }
  0x7b   : > { %427 = vperm.xlu0 %845, %v179_v13  }
  0x7d   : > { %411 = vperm.xlu1 %840, %v994_v9  }
  0x7f   : > { %439 = vperm.xlu0 %845, %v182_v14  }
  0x81   : > { %841 = vset.pattern.permute.xlu1 %v924_v20 }
  0x82   : > { %507 = vperm.xlu1 %841, %v988_v6  }
  0x83   : > { %848 = vset.pattern.permute.xlu0 %v924_v20 }
  0x84   : > { %539 = vperm.xlu0 %848, %v182_v14  }
  0x86   : > { %511 = vperm.xlu1 %841, %v994_v9  }
  0x88   : > { %547 = vperm.xlu0 %848, %v1016_v16  }
  0x8a   : > { %842 = vset.pattern.permute.xlu1 %v923_v19 }
  0x8b   : > { %419 = vperm.xlu1 %842, %v1001_v11  }
  0x8f   : > { %423 = vperm.xlu1 %842, %v998_v10  }
  0x93   : > { %843 = vset.pattern.permute.xlu1 %v924_v20 }
  0x94   : > { %519 = vperm.xlu1 %843, %v1001_v11  }
  0x98   : > { %523 = vperm.xlu1 %843, %v998_v10  }
  0x9a   : > { %v199_v21 = vpop.permute.xlu1 %198  ;;  %v1046_v22 = vpop.permute.xlu0 %188 }
  0x9b   : > { %v272_v51 = vmul.f32 %v1071_v42, %v199_v21 }
  0x9c   : > { %844 = vset.pattern.permute.xlu1 %v923_v19 }
  0x9d   : > { %431 = vperm.xlu1 %844, %v1006_v12  }
  0x9e   : > { %v1049_v23 = vpop.permute.xlu1 %203  ;;  %v194_v24 = vpop.permute.xlu0 %193 }
  0x9f   : > { %v271_v44 = vmul.f32 %v1071_v42, %v194_v24  ;;  %v552_v24 = vsub.s32 3, %v267_v34 }
  0xa1   : > { %435 = vperm.xlu1 %844, %v1012_v15   ;;  %v1123_v31 = vrot.slane %v185_v39, %v552_v24 }
  0xa2   : > { %v1052_v25 = vpop.permute.xlu1 %213  ;;  %v209_v26 = vpop.permute.xlu0 %208 }
  0xa3   : > { %v274_v53 = vmul.f32 %v1071_v42, %v209_v26 }
  0xa5   : > { %846 = vset.pattern.permute.xlu1 %v924_v20 }
  0xa6   : > { %v1054_v27 = vpop.permute.xlu1 %223  ;;  %531 = vperm.xlu1 %846, %v1006_v12   ;;  %v219_v28 = vpop.permute.xlu0 %218 }
  0xa7   : > { %v276_v58 = vmul.f32 %v1071_v42, %v219_v28 }
  0xaa   : > { %v1057_v29 = vpop.permute.xlu1 %233  ;;  %535 = vperm.xlu1 %846, %v1012_v15   ;;  %v229_v30 = vpop.permute.xlu0 %228  ;;  %v452_v15 = vsub.s32 2, %v267_v34 }
  0xab   : > { %v278_v2 = vmul.f32 %v1071_v42, %v229_v30 }
  0xac   : > { %v1120_v21 = vrot.slane %v185_v39, %v452_v15 }
  0xae   : > { %v1060_v32 = vpop.permute.xlu1 %243  ;;  %847 = vset.pattern.permute.xlu1 %v923_v19  ;;  %v239_v33 = vpop.permute.xlu0 %238 }
  0xaf   : > { %443 = vperm.xlu1 %847, %v1019_v17   ;;  %v280_v7 = vmul.f32 %v1071_v42, %v239_v33  ;;  %v270_v33 = vmul.f32 %v1071_v42, %v1046_v22 }
  0xb2   : > { %v1063_v35 = vpop.permute.xlu1 %253  ;;  %v249_v36 = vpop.permute.xlu0 %248 }
  0xb3   : > { %447 = vperm.xlu1 %847, %v1016_v16   ;;  %v282_v12 = vmul.f32 %v1071_v42, %v249_v36 }
  0xb6   : > { %v1069_v40 = vpop.permute.xlu1 %263  ;;  %v259_v41 = vpop.permute.xlu0 %258 }
  0xb7   : > { %849 = vset.pattern.permute.xlu1 %v924_v20  ;;  %v284_v18 = vmul.f32 %v1071_v42, %v259_v41 }
  0xb8   : > { %543 = vperm.xlu1 %849, %v1019_v17  }
  0xbb   : > { %v292_v45 = vpop.permute.xlu1 %291  ;;  %v288_v46 = vpop.permute.xlu0 %287 }
  0xbc   : > { %v355_v47 = vmul.f32 %v1074_v43, %v292_v45  ;;  %v354_v36 = vmul.f32 %v1074_v43, %v288_v46 }
  0xbe   : > { %v371_v48 = vadd.f32 %v355_v47, %v271_v44  ;;  %v370_v47 = vadd.f32 %v354_v36, %v270_v33 }
  0xbf   : > { %v296_v49 = vpop.permute.xlu1 %295  ;;  %v1078_v50 = vpop.permute.xlu0 %299 }
  0xc0   : > { %v356_v52 = vmul.f32 %v1074_v43, %v296_v49 }
  0xc2   : > { %v1083_v54 = vadd.f32 %v356_v52, %v272_v51 }
  0xc3   : > { %v304_v55 = vpop.permute.xlu1 %303  ;;  %v1085_v56 = vpop.permute.xlu0 %307 }
  0xc4   : > { %v358_v57 = vmul.f32 %v1074_v43, %v304_v55 }
  0xc6   : > { %v1089_v59 = vadd.f32 %v358_v57, %v274_v53 }
  0xc7   : > { %v312_v60 = vpop.permute.xlu1 %311  ;;  %v1091_v61 = vpop.permute.xlu0 %315 }
  0xc8   : > { %v360_v62 = vmul.f32 %v1074_v43, %v312_v60 }
  0xca   : > { %v1094_v63 = vadd.f32 %v360_v62, %v276_v58 }
  0xcb   : > { %v320_v0 = vpop.permute.xlu1 %319  ;;  %v1096_v1 = vpop.permute.xlu0 %323 }
  0xcc   : > { %v362_v3 = vmul.f32 %v1074_v43, %v320_v0 }
  0xce   : > { %v1100_v4 = vadd.f32 %v362_v3, %v278_v2 }
  0xcf   : > { %v328_v5 = vpop.permute.xlu1 %327  ;;  %v1102_v6 = vpop.permute.xlu0 %331 }
  0xd0   : > { %v364_v8 = vmul.f32 %v1074_v43, %v328_v5  ;;  %v357_v5 = vmul.f32 %v1074_v43, %v1078_v50 }
  0xd2   : > { %v1106_v9 = vadd.f32 %v364_v8, %v280_v7 }
  0xd3   : > { %v336_v10 = vpop.permute.xlu1 %335  ;;  %v1108_v11 = vpop.permute.xlu0 %339 }
  0xd4   : > { %v366_v13 = vmul.f32 %v1074_v43, %v336_v10 }
  0xd6   : > { %v1112_v14 = vadd.f32 %v366_v13, %v282_v12  ;;  %v273_v13 = vmul.f32 %v1071_v42, %v1049_v23 }
  0xd7   : > { %v344_v16 = vpop.permute.xlu1 %343  ;;  %v1114_v17 = vpop.permute.xlu0 %347 }
  0xd8   : > { %v368_v19 = vmul.f32 %v1074_v43, %v344_v16 }
  0xda   : > { %v1118_v20 = vadd.f32 %v368_v19, %v284_v18  ;;  %v373_v19 = vadd.f32 %v357_v5, %v273_v13 }
  0xdc   : > { %v388_v26 = vpop.permute.xlu1 %387  ;;  %v392_v28 = vpop.permute.xlu0 %391 }
  0xdd   : > { %v455_v30 = vmul.f32 %v1120_v21, %v392_v28  ;;  %v454_v41 = vmul.f32 %v1120_v21, %v388_v26 }
  0xdf   : > { %v471_v44 = vadd.f32 %v455_v30, %v371_v48  ;;  %v470_v52 = vadd.f32 %v454_v41, %v370_v47 }
  0xe0   : > { %v396_v37 = vpop.permute.xlu1 %395 }
  0xe1   : > { %v492_v38 = vpop.permute.xlu0 %491  ;;  %v456_v60 = vmul.f32 %v1120_v21, %v396_v37 }
  0xe2   : > { %v555_v45 = vmul.f32 %v1123_v31, %v492_v38 }
  0xe3   : > { %v472_v15 = vadd.f32 %v456_v60, %v1083_v54  ;;  %v277_v60 = vmul.f32 %v1071_v42, %v1054_v27 }
  0xe4   : > { %v571_v34 = vadd.f32 %v555_v45, %v471_v44 }
  0xe5   : > { %v488_v49 = vpop.permute.xlu1 %487  ;;  %v504_v51 = vpop.permute.xlu0 %503 }
  0xe6   : > { %v587_v53 = vmax.f32 %v571_v34, 0.0  ;;  %v554_v39 = vmul.f32 %v1123_v31, %v488_v49  ;;  %v558_v50 = vmul.f32 %v1123_v31, %v504_v51 }
  0xe8   : > { %v570_v55 = vadd.f32 %v554_v39, %v470_v52  ;;  %v641_v57 = vmul.f32 %v587_v53, %v587_v53  ;;  %v604_v48 = vsel %vm602_vm1, %v587_v53, 0.0  ;;  %v361_v39 = vmul.f32 %v1074_v43, %v1091_v61 }
  0xe9   : > { %v516_v22 = vpop.permute.xlu0 %515 }
  0xea   : > { %v586_v46 = vmax.f32 %v570_v55, 0.0  ;;  %v400_v58 = vpop.permute.xlu1 %399  ;;  %v657_v7 = vsel %vm602_vm1, %v641_v57, 0.0  ;;  %v561_v27 = vmul.f32 %v1123_v31, %v516_v22 }
  0xeb   : > { %v457_v16 = vmul.f32 %v1120_v21, %v400_v58 }
  0xec   : > { %v603_v62 = vsel %vm602_vm1, %v586_v46, 0.0  ;;  %v640_v0 = vmul.f32 %v586_v46, %v586_v46 }
  0xed   : > { %v605_v2 = vadd.f32 %v604_v48, %v603_v62  ;;  %v1134_v3 = vpop.permute.xlu0 %527  ;;  %v473_v33 = vadd.f32 %v457_v16, %v373_v19  ;;  %v359_v48 = vmul.f32 %v1074_v43, %v1085_v56 }
  0xee   : > { %v656_v8 = vsel %vm602_vm1, %v640_v0, 0.0 }
  0xef   : > { %v658_v10 = vadd.f32 %v657_v7, %v656_v8  ;;  %v496_v12 = vpop.permute.xlu1 %495  ;;  %v275_v7 = vmul.f32 %v1071_v42, %v1052_v25  ;;  %v377_v8 = vadd.f32 %v361_v39, %v277_v60 }
  0xf0   : > { %v556_v18 = vmul.f32 %v1123_v31, %v496_v12 }
  0xf1   : > { %v375_v13 = vadd.f32 %v359_v48, %v275_v7  ;;  %v363_v48 = vmul.f32 %v1074_v43, %v1096_v1 }
  0xf2   : > { %v572_v24 = vadd.f32 %v556_v18, %v472_v15  ;;  %v404_v26 = vpop.permute.xlu0 %403 }
  0xf3   : > { %v458_v28 = vmul.f32 %v1120_v21, %v404_v26  ;;  %v500_v30 = vpop.permute.xlu1 %499 }
  0xf4   : > { %v588_v36 = vmax.f32 %v572_v24, 0.0  ;;  %v557_v37 = vmul.f32 %v1123_v31, %v500_v30 }
  0xf5   : > { %v474_v23 = vadd.f32 %v458_v28, %v1089_v59 }
  0xf6   : > { %v606_v54 = vsel %vm602_vm1, %v588_v36, 0.0  ;;  %v642_v38 = vmul.f32 %v588_v36, %v588_v36  ;;  %v573_v41 = vadd.f32 %v557_v37, %v473_v33  ;;  %v416_v53 = vpop.permute.xlu0 %415 }
  0xf7   : > { %v607_v44 = vadd.f32 %v606_v54, %v605_v2  ;;  %v574_v45 = vadd.f32 %v558_v50, %v474_v23  ;;  %v461_v0 = vmul.f32 %v1120_v21, %v416_v53 }
  0xf8   : > { %v659_v47 = vsel %vm602_vm1, %v642_v38, 0.0  ;;  %v589_v34 = vmax.f32 %v573_v41, 0.0  ;;  %v408_v49 = vpop.permute.xlu1 %407 }
  0xf9   : > { %v660_v51 = vadd.f32 %v659_v47, %v658_v10  ;;  %v590_v52 = vmax.f32 %v574_v45, 0.0  ;;  %v459_v10 = vmul.f32 %v1120_v21, %v408_v49  ;;  %v477_v15 = vadd.f32 %v461_v0, %v377_v8 }
  0xfa   : > { %v608_v55 = vsel %vm602_vm1, %v589_v34, 0.0  ;;  %v643_v57 = vmul.f32 %v589_v34, %v589_v34  ;;  %v428_v45 = vpop.permute.xlu0 %427 }
  0xfb   : > { %v610_v59 = vsel %vm602_vm1, %v590_v52, 0.0  ;;  %v644_v46 = vmul.f32 %v590_v52, %v590_v52  ;;  %v609_v58 = vadd.f32 %v608_v55, %v607_v44  ;;  %v475_v18 = vadd.f32 %v459_v10, %v375_v13 }
  0xfc   : > { %v661_v62 = vsel %vm602_vm1, %v643_v57, 0.0  ;;  %v412_v2 = vpop.permute.xlu1 %411  ;;  %v577_v26 = vadd.f32 %v561_v27, %v477_v15  ;;  %v464_v53 = vmul.f32 %v1120_v21, %v428_v45 }
  0xfd   : > { %v663_v61 = vsel %vm602_vm1, %v644_v46, 0.0  ;;  %v662_v5 = vadd.f32 %v661_v62, %v660_v51  ;;  %v611_v12 = vadd.f32 %v610_v59, %v609_v58  ;;  %v460_v19 = vmul.f32 %v1120_v21, %v412_v2 }
  0xfe   : > { %v593_v36 = vmax.f32 %v577_v26, 0.0  ;;  %v564_v62 = vmul.f32 %v1123_v31, %v1134_v3  ;;  %v480_v0 = vadd.f32 %v464_v53, %v1106_v9 }
  0xff   : > { %v664_v56 = vadd.f32 %v663_v61, %v662_v5  ;;  %v476_v25 = vadd.f32 %v460_v19, %v1094_v63  ;;  %v279_v61 = vmul.f32 %v1071_v42, %v1057_v29  ;;  %v440_v29 = vpop.permute.xlu0 %439 }
 0x100   : > { %v647_v34 = vmul.f32 %v593_v36, %v593_v36  ;;  %v616_v52 = vsel %vm602_vm1, %v593_v36, 0.0  ;;  %v365_v36 = vmul.f32 %v1074_v43, %v1102_v6  ;;  %v467_v6 = vmul.f32 %v1120_v21, %v440_v29 }
 0x101   : > { %v508_v16 = vpop.permute.xlu1 %507  ;;  %v379_v10 = vadd.f32 %v363_v48, %v279_v61 }
 0x102   : > { %v559_v24 = vmul.f32 %v1123_v31, %v508_v16  ;;  %v669_v46 = vsel %vm602_vm1, %v647_v34, 0.0 }
 0x104   : > { %v575_v50 = vadd.f32 %v559_v24, %v475_v18 }
 0x105   : > { %v512_v28 = vpop.permute.xlu1 %511 }
 0x106   : > { %v591_v30 = vmax.f32 %v575_v50, 0.0  ;;  %v560_v33 = vmul.f32 %v1123_v31, %v512_v28 }
 0x108   : > { %v612_v37 = vsel %vm602_vm1, %v591_v30, 0.0  ;;  %v645_v22 = vmul.f32 %v591_v30, %v591_v30  ;;  %v576_v23 = vadd.f32 %v560_v33, %v476_v25 }
 0x109   : > { %v613_v54 = vadd.f32 %v612_v37, %v611_v12  ;;  %v580_v12 = vadd.f32 %v564_v62, %v480_v0  ;;  %v367_v37 = vmul.f32 %v1074_v43, %v1108_v11 }
 0x10a   : > { %v665_v38 = vsel %vm602_vm1, %v645_v22, 0.0  ;;  %v592_v41 = vmax.f32 %v576_v23, 0.0  ;;  %v420_v44 = vpop.permute.xlu1 %419 }
 0x10b   : > { %v666_v47 = vadd.f32 %v665_v38, %v664_v56  ;;  %v462_v58 = vmul.f32 %v1120_v21, %v420_v44  ;;  %v596_v56 = vmax.f32 %v580_v12, 0.0  ;;  %v281_v38 = vmul.f32 %v1071_v42, %v1060_v32 }
 0x10c   : > { %v614_v49 = vsel %vm602_vm1, %v592_v41, 0.0  ;;  %v646_v51 = vmul.f32 %v592_v41, %v592_v41  ;;  %v540_v41 = vpop.permute.xlu0 %539 }
 0x10d   : > { %v615_v63 = vadd.f32 %v614_v49, %v613_v54  ;;  %v478_v5 = vadd.f32 %v462_v58, %v1100_v4  ;;  %v650_v28 = vmul.f32 %v596_v56, %v596_v56  ;;  %v622_v22 = vsel %vm602_vm1, %v596_v56, 0.0 }
 0x10e   : > { %v667_v39 = vsel %vm602_vm1, %v646_v51, 0.0  ;;  %v424_v55 = vpop.permute.xlu1 %423  ;;  %v381_v51 = vadd.f32 %v365_v36, %v281_v38 }
 0x10f   : > { %v668_v57 = vadd.f32 %v667_v39, %v666_v47  ;;  %v617_v59 = vadd.f32 %v616_v52, %v615_v63  ;;  %v463_v7 = vmul.f32 %v1120_v21, %v424_v55  ;;  %v283_v47 = vmul.f32 %v1071_v42, %v1063_v35 }
 0x110   : > { %v675_v34 = vsel %vm602_vm1, %v650_v28, 0.0  ;;  %v567_v52 = vmul.f32 %v1123_v31, %v540_v41 }
 0x111   : > { %v670_v60 = vadd.f32 %v669_v46, %v668_v57  ;;  %v479_v1 = vadd.f32 %v463_v7, %v379_v10  ;;  %v383_v63 = vadd.f32 %v367_v37, %v283_v47  ;;  %v369_v7 = vmul.f32 %v1074_v43, %v1114_v17 }
 0x113   : > { %v520_v2 = vpop.permute.xlu1 %519  ;;  %v483_v39 = vadd.f32 %v467_v6, %v383_v63 }
 0x114   : > { %v562_v8 = vmul.f32 %v1123_v31, %v520_v2 }
 0x116   : > { %v578_v13 = vadd.f32 %v562_v8, %v478_v5 }
 0x117   : > { %v524_v27 = vpop.permute.xlu1 %523 }
 0x118   : > { %v594_v15 = vmax.f32 %v578_v13, 0.0  ;;  %v563_v3 = vmul.f32 %v1123_v31, %v524_v27 }
 0x11a   : > { %v618_v9 = vsel %vm602_vm1, %v594_v15, 0.0  ;;  %v648_v16 = vmul.f32 %v594_v15, %v594_v15  ;;  %v579_v18 = vadd.f32 %v563_v3, %v479_v1  ;;  %v548_v3 = vpop.permute.xlu0 %547 }
 0x11b   : > { %v619_v19 = vadd.f32 %v618_v9, %v617_v59  ;;  %v583_v59 = vadd.f32 %v567_v52, %v483_v39 }
 0x11c   : > { %v671_v4 = vsel %vm602_vm1, %v648_v16, 0.0  ;;  %v595_v24 = vmax.f32 %v579_v18, 0.0  ;;  %v432_v26 = vpop.permute.xlu1 %431 }
 0x11d   : > { %v672_v50 = vadd.f32 %v671_v4, %v670_v60  ;;  %v465_v11 = vmul.f32 %v1120_v21, %v432_v26  ;;  %v599_v62 = vmax.f32 %v583_v59, 0.0 }
 0x11e   : > { %v620_v25 = vsel %vm602_vm1, %v595_v24, 0.0  ;;  %v649_v30 = vmul.f32 %v595_v24, %v595_v24 }
 0x11f   : > { %v621_v33 = vadd.f32 %v620_v25, %v619_v19  ;;  %v481_v32 = vadd.f32 %v465_v11, %v381_v51  ;;  %v653_v27 = vmul.f32 %v599_v62, %v599_v62  ;;  %v628_v16 = vsel %vm602_vm1, %v599_v62, 0.0 }
 0x120   : > { %v673_v23 = vsel %vm602_vm1, %v649_v30, 0.0  ;;  %v436_v54 = vpop.permute.xlu1 %435  ;;  %v569_v19 = vmul.f32 %v1123_v31, %v548_v3 }
 0x121   : > { %v674_v44 = vadd.f32 %v673_v23, %v672_v50  ;;  %v623_v45 = vadd.f32 %v622_v22, %v621_v33  ;;  %v466_v55 = vmul.f32 %v1120_v21, %v436_v54 }
 0x123   : > { %v676_v49 = vadd.f32 %v675_v34, %v674_v44  ;;  %v482_v58 = vadd.f32 %v466_v55, %v1112_v14  ;;  %v285_v14 = vmul.f32 %v1071_v42, %v1069_v40  ;;  %v681_v40 = vsel %vm602_vm1, %v653_v27, 0.0 }
 0x125   : > { %v532_v53 = vpop.permute.xlu1 %531  ;;  %v385_v9 = vadd.f32 %v369_v7, %v285_v14 }
 0x126   : > { %v565_v57 = vmul.f32 %v1123_v31, %v532_v53 }
 0x128   : > { %v581_v35 = vadd.f32 %v565_v57, %v481_v32  ;;  %v695_v57 = vld [vmem:[#allocation2] sm:$0x3] }
 0x129   : > { %v536_v46 = vpop.permute.xlu1 %535 }
 0x12a   : > { %v597_v60 = vmax.f32 %v581_v35, 0.0  ;;  %v566_v48 = vmul.f32 %v1123_v31, %v536_v46 }
 0x12c   : > { %v624_v0 = vsel %vm602_vm1, %v597_v60, 0.0  ;;  %v651_v2 = vmul.f32 %v597_v60, %v597_v60  ;;  %v582_v61 = vadd.f32 %v566_v48, %v482_v58 }
 0x12d   : > { %v625_v5 = vadd.f32 %v624_v0, %v623_v45 }
 0x12e   : > { %v677_v8 = vsel %vm602_vm1, %v651_v2, 0.0  ;;  %v598_v10 = vmax.f32 %v582_v61, 0.0  ;;  %v444_v12 = vpop.permute.xlu1 %443 }
 0x12f   : > { %v678_v13 = vadd.f32 %v677_v8, %v676_v49  ;;  %v468_v42 = vmul.f32 %v1120_v21, %v444_v12 }
 0x130   : > { %v626_v1 = vsel %vm602_vm1, %v598_v10, 0.0  ;;  %v652_v15 = vmul.f32 %v598_v10, %v598_v10 }
 0x131   : > { %v627_v56 = vadd.f32 %v626_v1, %v625_v5  ;;  %v484_v25 = vadd.f32 %v468_v42, %v1118_v20 }
 0x132   : > { %v679_v18 = vsel %vm602_vm1, %v652_v15, 0.0  ;;  %v448_v43 = vpop.permute.xlu1 %447 }
 0x133   : > { %v680_v17 = vadd.f32 %v679_v18, %v678_v13  ;;  %v469_v29 = vmul.f32 %v1120_v21, %v448_v43  ;;  %v629_v4 = vadd.f32 %v628_v16, %v627_v56 }
 0x135   : > { %v485_v24 = vadd.f32 %v469_v29, %v385_v9  ;;  %v682_v26 = vadd.f32 %v681_v40, %v680_v17 }
 0x137   : > { %v585_v50 = vadd.f32 %v569_v19, %v485_v24  ;;  %v544_v28 = vpop.permute.xlu1 %543 }
 0x138   : > { %v568_v30 = vmul.f32 %v1123_v31, %v544_v28 }
 0x139   : > { %v601_v33 = vmax.f32 %v585_v50, 0.0 }
 0x13a   : > { %v584_v36 = vadd.f32 %v568_v30, %v484_v25 }
 0x13b   : > { %v655_v22 = vmul.f32 %v601_v33, %v601_v33  ;;  %v632_v41 = vsel %vm602_vm1, %v601_v33, 0.0 }
 0x13c   : > { %v600_v37 = vmax.f32 %v584_v36, 0.0 }
 0x13d   : > { %v685_v47 = vsel %vm602_vm1, %v655_v22, 0.0 }
 0x13e   : > { %v630_v23 = vsel %vm602_vm1, %v600_v37, 0.0  ;;  %v654_v54 = vmul.f32 %v600_v37, %v600_v37 }
 0x13f   : > { %v631_v38 = vadd.f32 %v630_v23, %v629_v4 }
 0x140   : > { %v683_v21 = vsel %vm602_vm1, %v654_v54, 0.0 }
 0x141   : > { %v633_v44 = vadd.f32 %v632_v41, %v631_v38  ;;  %v684_v45 = vadd.f32 %v683_v21, %v682_v26 }
 0x143   : > { %v634_v34 = vrot.slane %v633_v44, 4  ;;  %v686_v20 = vadd.f32 %v685_v47, %v684_v45 }
 0x145   : > { %v635_v6 = vadd.f32 %v634_v34, %v633_v44  ;;  %v687_v31 = vrot.slane %v686_v20, 4 }
 0x147   : > { %v636_v11 = vrot.slane %v635_v6, 2  ;;  %v688_v49 = vadd.f32 %v687_v31, %v686_v20 }
 0x149   : > { %v637_v51 = vadd.f32 %v636_v11, %v635_v6  ;;  %v689_v63 = vrot.slane %v688_v49, 2 }
 0x14b   : > { %v638_v52 = vrot.slane %v637_v51, 1  ;;  %v690_v53 = vadd.f32 %v689_v63, %v688_v49 }
 0x14d   : > { %v691_v39 = vrot.slane %v690_v53, 1  ;;  %v639_v32 = vadd.f32 %v638_v52, %v637_v51 }
 0x14f   : > { %v692_v55 = vadd.f32 %v691_v39, %v690_v53 }
 0x151   : > { %v694_v59 = vsel %vm693_vm2, %v639_v32, %v692_v55 }
 0x152   : > { %v696_v35 = vadd.f32 %v695_v57, %v694_v59 }
 0x154   : > { %698 = vst.msk [vmem:[#allocation2] sm:$0x3] %vm697_vm3, %v696_v35 }
 0x155   : > { %863 = shalt.err (!%p860_p3)
}
 0x156   : > { %s864_s5 = scalar_lea.hbm %s1274_s2, 32 }
 0x157   : > { %p865_p4 = scmp.ne.s32.totalorder %s1274_s2, %s864_s5  ;;  %p870_p7 = scmp.lt.u32.totalorder %s864_s5, %s1274_s2 }
 0x159   : > { %p866_p5 = pnand %p865_p4, %p1231_p10 }
 0x15b   : > { %p867_p6 = pneg %p866_p5 }
 0x15d   : > { %p872_p8 = pnand %p870_p7, %p867_p6 }
 0x15f   : > { %875 = shalt.err (!%p872_p8)
}
 0x160   : > { %779 = dma.vmem_to_hbm [thread:$0]  (%p1231_p10), %s707_s28, 32, %s1274_s2, [#allocation3]  }
 0x161   : > { %897 = dma.done.wait (%p1231_p10), [#allocation3], 32  }
 0x162   : > { %899 = vsyncadd (%p1231_p10), [#allocation3], 4294967264 }
 0x163 PF: > { %s13_s13 = sadd.s32 1, %s918_s13   ;;  %s1276_s9 = smov %s910_s11 }
 0x164   : > { %p10_p9 = scmp.ge.s32.totalorder %s13_s13, 6   ;;  %s1277_s10 = smov %s914_s12 }
 0x165   : > { %s1278_s11 = smov %s1281_s15  ;;  %s1279_s12 = smov %s1285_s16 }
 0x166   :  { %12 = sbr.rel (!%p10_p9) target bundleno = 3 (0x3), region = 59 }
 0x16d   :  { %719 = vsyncpa [#allocation3], 1 }
 0x16e   :  { %721 = vsyncpa [#allocation3 + $0x1], 1 }

</bundles_post_ra>
